<compile_context>
chip_gen: v5e
topology: v5e:2x2
jax: 0.10.0
libtpu: 0.0.40
codegen_flags: <defaults>
</compile_context>

<pallas_src>
import jax
import jax.numpy as jnp
import numpy as np
from jax import lax
from jax.experimental import pallas as pl
from jax.experimental.pallas import tpu as pltpu


def gru_encoder_kernel(x_ref, wih_ref, whh_ref, bih_ref, bhh_ref,
                       h_out_ref, gi_scratch):
    """Fused single-layer GRU encoder (returns final hidden state).

    x_ref:      (T*Bp, E)  bf16   time-major, batch padded to Bp (mult of 8)
    wih_ref:    (E, 3H)    bf16   gates concatenated [r | z | n]
    whh_ref:    (H, 3H)    bf16   gates concatenated [r | z | n]
    bih_ref:    (1, 3H)    f32
    bhh_ref:    (1, 3H)    f32
    h_out_ref:  (Bp, H)    f32
    gi_scratch: (T*Bp, 3H) f32    hoisted input projections for all steps
    """
    Bp, H = h_out_ref.shape
    TBp = x_ref.shape[0]
    T = TBp // Bp
    H2 = 2 * H

    # ---- Phase 1: one fused input projection for all timesteps & gates. ----
    gi_scratch[...] = (
        jnp.dot(x_ref[...], wih_ref[...], preferred_element_type=jnp.float32)
        + bih_ref[...])

    # ---- Hoist recurrent weights / bias out of the serial loop. ----
    w_hh = whh_ref[...]          # (H, 3H) bf16, stays resident in vregs
    b_hh = bhh_ref[...]          # (1, 3H) f32

    # ---- Phase 2: serial GRU recurrence, one matmul per step. ----
    def step(t, h):
        off = pl.multiple_of(t * Bp, Bp)          # Bp multiple of 8 -> aligned
        gi = gi_scratch[pl.ds(off, Bp), :]        # (Bp, 3H) f32
        gh = jnp.dot(h.astype(jnp.bfloat16), w_hh,
                     preferred_element_type=jnp.float32) + b_hh
        rz = jax.nn.sigmoid(gi[:, :H2] + gh[:, :H2])   # r,z in one EUP pass
        r = rz[:, :H]
        z = rz[:, H:]
        n = jnp.tanh(gi[:, H2:] + r * gh[:, H2:])
        return (1.0 - z) * n + z * h

    h0 = jnp.zeros((Bp, H), jnp.float32)
    unroll = T if T <= 8 else 4                    # cap unroll for long T
    h_final = lax.fori_loop(0, T, step, h0, unroll=unroll)

    # Store the result exactly once.
    h_out_ref[...] = h_final


def gru_encoder(x_all, w_ih_cat, w_hh_cat, b_ih_cat, b_hh_cat,
                *, t_steps, b_pad, hid_dim):
    """x_all: (T*Bp, E) bf16; returns final hidden state (Bp, H) f32."""
    E = x_all.shape[1]
    H3 = 3 * hid_dim

    # Everything is resident (grid=(1,)): size the scoped-VMEM limit explicitly.
    gi_bytes = t_steps * b_pad * H3 * 4
    resident = (2 * (x_all.size * 2                      # x (bf16), dbl-buffered
                     + w_ih_cat.size * 2 + w_hh_cat.size * 2
                     + b_ih_cat.size * 4 + b_hh_cat.size * 4
                     + b_pad * hid_dim * 4)
                + gi_bytes)
    vmem_limit = int(min(max(2 * resident + (4 << 20), 32 << 20), 64 << 20))

    return pl.pallas_call(
        gru_encoder_kernel,
        out_shape=jax.ShapeDtypeStruct((b_pad, hid_dim), jnp.float32),
        grid_spec=pltpu.PrefetchScalarGridSpec(
            num_scalar_prefetch=0,
            grid=(1,),
            in_specs=[
                pl.BlockSpec((t_steps * b_pad, E), lambda i: (0, 0)),
                pl.BlockSpec((E, H3), lambda i: (0, 0)),
                pl.BlockSpec((hid_dim, H3), lambda i: (0, 0)),
                pl.BlockSpec((1, H3), lambda i: (0, 0)),
                pl.BlockSpec((1, H3), lambda i: (0, 0)),
            ],
            out_specs=pl.BlockSpec((b_pad, hid_dim), lambda i: (0, 0)),
            scratch_shapes=[pltpu.VMEM((t_steps * b_pad, H3), jnp.float32)],
        ),
        compiler_params=pltpu.CompilerParams(
            dimension_semantics=("arbitrary",),
            vmem_limit_bytes=vmem_limit),
    )(x_all, w_ih_cat, w_hh_cat, b_ih_cat, b_hh_cat)


def prepare_encoder_params(params):
    """One-time weight repack (hoisted out of every forward pass).

    PyTorch layout: weight_ih_l0 (3H, E), weight_hh_l0 (3H, H), gate order
    (r, z, n). We only need a transpose to get right-multiply, gate-
    concatenated (E, 3H)/(H, 3H) matrices; cast to bf16 for the MXU."""
    h3 = params["w_hh"].shape[0]
    return {
        "embedding": params["embedding"],
        "w_ih_cat": params["w_ih"].T.astype(jnp.bfloat16),        # (E, 3H)
        "w_hh_cat": params["w_hh"].T.astype(jnp.bfloat16),        # (H, 3H)
        "b_ih_cat": params["b_ih"].reshape(1, h3).astype(jnp.float32),
        "b_hh_cat": params["b_hh"].reshape(1, h3).astype(jnp.float32),
        "hid_dim": h3 // 3,
    }


def encoder_forward(src, prepped):
    """src: (T, B) int32 token ids. Returns hidden of shape (1, B, H)."""
    T, B = src.shape
    H = prepped["hid_dim"]
    # Embedding lookup + dropout (eval mode -> identity) are glue in plain JAX.
    # TODO(synk): training-mode dropout (Bernoulli mask) not applied; the
    # module is evaluated with eval-mode semantics (dropout == identity).
    embedded = prepped["embedding"][src]                      # (T, B, E) f32

    # Pad batch up to a sublane multiple so per-step gi slices stay 8-aligned.
    b_pad = max(8, ((B + 7) // 8) * 8)
    if b_pad != B:
        embedded = jnp.pad(embedded, ((0, 0), (0, b_pad - B), (0, 0)))
    x_all = embedded.astype(jnp.bfloat16).reshape(T * b_pad, -1)

    h = gru_encoder(x_all, prepped["w_ih_cat"], prepped["w_hh_cat"],
                    prepped["b_ih_cat"], prepped["b_hh_cat"],
                    t_steps=T, b_pad=b_pad, hid_dim=H)
    return h[None, :B, :]                                     # (1, B, H)


def reference_forward(src, params):
    """Pure-JAX reference (lax.scan GRU, PyTorch gate order). Uses the same
    bf16 matmul operands / f32 accumulation as the kernel so the check is
    apples-to-apples."""
    embedded = params["embedding"][src]
    H = params["w_hh"].shape[1]
    w_ih_t = params["w_ih"].T.astype(jnp.bfloat16)            # (E, 3H)
    w_hh_t = params["w_hh"].T.astype(jnp.bfloat16)            # (H, 3H)
    b_ih = params["b_ih"].astype(jnp.float32)
    b_hh = params["b_hh"].astype(jnp.float32)

    def step(h, x):
        gi = jnp.dot(x.astype(jnp.bfloat16), w_ih_t,
                     preferred_element_type=jnp.float32) + b_ih
        gh = jnp.dot(h.astype(jnp.bfloat16), w_hh_t,
                     preferred_element_type=jnp.float32) + b_hh
        i_r, i_z, i_n = gi[:, :H], gi[:, H:2 * H], gi[:, 2 * H:]
        h_r, h_z, h_n = gh[:, :H], gh[:, H:2 * H], gh[:, 2 * H:]
        r = jax.nn.sigmoid(i_r + h_r)
        z = jax.nn.sigmoid(i_z + h_z)
        n = jnp.tanh(i_n + r * h_n)
        return (1.0 - z) * n + z * h, None

    B = src.shape[1]
    h0 = jnp.zeros((B, H), jnp.float32)
    h_last, _ = lax.scan(step, h0, embedded)
    return h_last[None, :, :]


def make_params(key, input_dim, emb_dim, hid_dim):
    k_emb, k_wih, k_whh, k_bih, k_bhh = jax.random.split(key, 5)
    bound = 1.0 / np.sqrt(hid_dim)
    embedding = jax.random.normal(k_emb, (input_dim, emb_dim), jnp.float32)
    # PyTorch layout: weight_ih_l0 (3H, E), weight_hh_l0 (3H, H), gates r,z,n.
    w_ih = jax.random.uniform(k_wih, (3 * hid_dim, emb_dim), jnp.float32,
                              -bound, bound)
    w_hh = jax.random.uniform(k_whh, (3 * hid_dim, hid_dim), jnp.float32,
                              -bound, bound)
    b_ih = jax.random.uniform(k_bih, (3 * hid_dim,), jnp.float32, -bound, bound)
    b_hh = jax.random.uniform(k_bhh, (3 * hid_dim,), jnp.float32, -bound, bound)
    return {"embedding": embedding, "w_ih": w_ih, "w_hh": w_hh,
            "b_ih": b_ih, "b_hh": b_hh}


if __name__ == "__main__":
    # Small shapes consistent with the module: vocab=32, emb=16, hid=32,
    # seq_len=8, batch=4, dropout=0.0 (eval semantics).
    INPUT_DIM, EMB_DIM, HID_DIM = 32, 16, 32
    T, B = 8, 4

    key = jax.random.PRNGKey(0)
    k_params, k_src = jax.random.split(key)
    params = make_params(k_params, INPUT_DIM, EMB_DIM, HID_DIM)
    src = jax.random.randint(k_src, (T, B), 0, INPUT_DIM, dtype=jnp.int32)

    prepped = prepare_encoder_params(params)      # one-time weight repack

    hidden = jax.block_until_ready(encoder_forward(src, prepped))
    hidden_ref = jax.block_until_ready(reference_forward(src, params))

    assert hidden.shape == (1, B, HID_DIM)
    assert np.allclose(np.asarray(hidden), np.asarray(hidden_ref),
                       rtol=2e-3, atol=2e-3)

    print("KERNEL_OK")
</pallas_src>

<mosaic_0001>
module attributes {stable_mosaic.version = 11 : i64} {
  func.func @gru_encoder_kernel(%arg0: i32, %arg1: memref<64x16xbf16, #tpu.memory_space<vmem>>, %arg2: memref<16x96xbf16, #tpu.memory_space<vmem>>, %arg3: memref<32x96xbf16, #tpu.memory_space<vmem>>, %arg4: memref<1x96xf32, #tpu.memory_space<vmem>>, %arg5: memref<1x96xf32, #tpu.memory_space<vmem>>, %arg6: memref<8x32xf32, #tpu.memory_space<vmem>>, %arg7: memref<64x96xf32, #tpu.memory_space<vmem>>) attributes {dimension_semantics = [#tpu.dimension_semantics<arbitrary>], iteration_bounds = array<i64: 1>, scalar_prefetch = 0 : i64, scratch_operands = 1 : i64, tpu.core_type = #tpu.core_type<tc>, window_params = [{pipeline_mode = #tpu.pipeline_mode<synchronous>, transform_indices = @transform_0, window_bounds = array<i64: 64, 16>}, {pipeline_mode = #tpu.pipeline_mode<synchronous>, transform_indices = @transform_1, window_bounds = array<i64: 16, 96>}, {pipeline_mode = #tpu.pipeline_mode<synchronous>, transform_indices = @transform_2, window_bounds = array<i64: 32, 96>}, {pipeline_mode = #tpu.pipeline_mode<synchronous>, transform_indices = @transform_3, window_bounds = array<i64: 1, 96>}, {pipeline_mode = #tpu.pipeline_mode<synchronous>, transform_indices = @transform_4, window_bounds = array<i64: 1, 96>}, {pipeline_mode = #tpu.pipeline_mode<synchronous>, transform_indices = @transform_5, window_bounds = array<i64: 8, 32>}]} {
    %c0 = arith.constant 0 : index
    %c0_0 = arith.constant 0 : index
    %0 = vector.load %arg1[%c0, %c0_0] : memref<64x16xbf16, #tpu.memory_space<vmem>>, vector<64x16xbf16>
    %c0_1 = arith.constant 0 : index
    %c0_2 = arith.constant 0 : index
    %1 = vector.load %arg2[%c0_1, %c0_2] : memref<16x96xbf16, #tpu.memory_space<vmem>>, vector<16x96xbf16>
    %cst = arith.constant dense<0.000000e+00> : vector<64x96xf32>
    %2 = tpu.matmul %0, %1, %cst {dimension_numbers = #tpu.dot_dimension_numbers<[1], [0], [0], [1], [0, 0, 1, 1], [], []>} : vector<64x16xbf16>, vector<16x96xbf16>, vector<64x96xf32> -> vector<64x96xf32>
    %c0_3 = arith.constant 0 : index
    %c0_4 = arith.constant 0 : index
    %3 = vector.load %arg4[%c0_3, %c0_4] : memref<1x96xf32, #tpu.memory_space<vmem>>, vector<1x96xf32>
    %4 = vector.broadcast %3 : vector<1x96xf32> to vector<64x96xf32>
    %5 = arith.addf %2, %4 : vector<64x96xf32>
    %c0_5 = arith.constant 0 : index
    %c0_6 = arith.constant 0 : index
    %6 = vector.load %arg7[%c0_5, %c0_6] : memref<64x96xf32, #tpu.memory_space<vmem>>, vector<64x96xf32>
    tpu.vector_store %arg7[%c0_5, %c0_6], %5 {strides = array<i32>} : memref<64x96xf32, #tpu.memory_space<vmem>>, vector<64x96xf32>,
    %c0_7 = arith.constant 0 : index
    %c0_8 = arith.constant 0 : index
    %7 = vector.load %arg3[%c0_7, %c0_8] : memref<32x96xbf16, #tpu.memory_space<vmem>>, vector<32x96xbf16>
    %c0_9 = arith.constant 0 : index
    %c0_10 = arith.constant 0 : index
    %8 = vector.load %arg5[%c0_9, %c0_10] : memref<1x96xf32, #tpu.memory_space<vmem>>, vector<1x96xf32>
    %cst_11 = arith.constant 0.000000e+00 : f32
    %9 = vector.broadcast %cst_11 : f32 to vector<8x32xf32>
    %c0_i32 = arith.constant 0 : i32
    %c8_i32 = arith.constant 8 : i32
    %10 = arith.muli %c0_i32, %c8_i32 : i32
    %11 = tpu.assume_multiple %10, 8 : i32
    %12 = arith.index_cast %11 : i32 to index
    %c0_12 = arith.constant 0 : index
    %13 = vector.load %arg7[%12, %c0_12] : memref<64x96xf32, #tpu.memory_space<vmem>>, vector<8x96xf32>
    %14 = arith.truncf %9 : vector<8x32xf32> to vector<8x32xbf16>
    %cst_13 = arith.constant dense<0.000000e+00> : vector<8x96xf32>
    %15 = tpu.matmul %14, %7, %cst_13 {dimension_numbers = #tpu.dot_dimension_numbers<[1], [0], [0], [1], [0, 0, 1, 1], [], []>} : vector<8x32xbf16>, vector<32x96xbf16>, vector<8x96xf32> -> vector<8x96xf32>
    %16 = vector.broadcast %8 : vector<1x96xf32> to vector<8x96xf32>
    %17 = arith.addf %15, %16 : vector<8x96xf32>
    %18 = vector.extract_strided_slice %13 {offsets = [0, 0], sizes = [8, 64], strides = [1, 1]} : vector<8x96xf32> to vector<8x64xf32>
    %19 = vector.extract_strided_slice %17 {offsets = [0, 0], sizes = [8, 64], strides = [1, 1]} : vector<8x96xf32> to vector<8x64xf32>
    %20 = arith.addf %18, %19 : vector<8x64xf32>
    %21 = arith.negf %20 : vector<8x64xf32>
    %22 = math.exp %21 : vector<8x64xf32>
    %cst_14 = arith.constant 1.000000e+00 : f32
    %23 = vector.broadcast %cst_14 : f32 to vector<8x64xf32>
    %24 = arith.addf %23, %22 : vector<8x64xf32>
    %25 = arith.divf %23, %24 : vector<8x64xf32>
    %26 = vector.extract_strided_slice %25 {offsets = [0, 0], sizes = [8, 32], strides = [1, 1]} : vector<8x64xf32> to vector<8x32xf32>
    %27 = vector.extract_strided_slice %25 {offsets = [0, 32], sizes = [8, 32], strides = [1, 1]} : vector<8x64xf32> to vector<8x32xf32>
    %28 = vector.extract_strided_slice %13 {offsets = [0, 64], sizes = [8, 32], strides = [1, 1]} : vector<8x96xf32> to vector<8x32xf32>
    %29 = vector.extract_strided_slice %17 {offsets = [0, 64], sizes = [8, 32], strides = [1, 1]} : vector<8x96xf32> to vector<8x32xf32>
    %30 = arith.mulf %26, %29 : vector<8x32xf32>
    %31 = arith.addf %28, %30 : vector<8x32xf32>
    %32 = math.tanh %31 : vector<8x32xf32>
    %cst_15 = arith.constant 1.000000e+00 : f32
    %33 = vector.broadcast %cst_15 : f32 to vector<8x32xf32>
    %34 = arith.subf %33, %27 : vector<8x32xf32>
    %35 = arith.mulf %34, %32 : vector<8x32xf32>
    %36 = arith.mulf %27, %9 : vector<8x32xf32>
    %37 = arith.addf %35, %36 : vector<8x32xf32>
    %c1_i32 = arith.constant 1 : i32
    %c8_i32_16 = arith.constant 8 : i32
    %38 = arith.muli %c1_i32, %c8_i32_16 : i32
    %39 = tpu.assume_multiple %38, 8 : i32
    %40 = arith.index_cast %39 : i32 to index
    %c0_17 = arith.constant 0 : index
    %41 = vector.load %arg7[%40, %c0_17] : memref<64x96xf32, #tpu.memory_space<vmem>>, vector<8x96xf32>
    %42 = arith.truncf %37 : vector<8x32xf32> to vector<8x32xbf16>
    %cst_18 = arith.constant dense<0.000000e+00> : vector<8x96xf32>
    %43 = tpu.matmul %42, %7, %cst_18 {dimension_numbers = #tpu.dot_dimension_numbers<[1], [0], [0], [1], [0, 0, 1, 1], [], []>} : vector<8x32xbf16>, vector<32x96xbf16>, vector<8x96xf32> -> vector<8x96xf32>
    %44 = vector.broadcast %8 : vector<1x96xf32> to vector<8x96xf32>
    %45 = arith.addf %43, %44 : vector<8x96xf32>
    %46 = vector.extract_strided_slice %41 {offsets = [0, 0], sizes = [8, 64], strides = [1, 1]} : vector<8x96xf32> to vector<8x64xf32>
    %47 = vector.extract_strided_slice %45 {offsets = [0, 0], sizes = [8, 64], strides = [1, 1]} : vector<8x96xf32> to vector<8x64xf32>
    %48 = arith.addf %46, %47 : vector<8x64xf32>
    %49 = arith.negf %48 : vector<8x64xf32>
    %50 = math.exp %49 : vector<8x64xf32>
    %cst_19 = arith.constant 1.000000e+00 : f32
    %51 = vector.broadcast %cst_19 : f32 to vector<8x64xf32>
    %52 = arith.addf %51, %50 : vector<8x64xf32>
    %53 = arith.divf %51, %52 : vector<8x64xf32>
    %54 = vector.extract_strided_slice %53 {offsets = [0, 0], sizes = [8, 32], strides = [1, 1]} : vector<8x64xf32> to vector<8x32xf32>
    %55 = vector.extract_strided_slice %53 {offsets = [0, 32], sizes = [8, 32], strides = [1, 1]} : vector<8x64xf32> to vector<8x32xf32>
    %56 = vector.extract_strided_slice %41 {offsets = [0, 64], sizes = [8, 32], strides = [1, 1]} : vector<8x96xf32> to vector<8x32xf32>
    %57 = vector.extract_strided_slice %45 {offsets = [0, 64], sizes = [8, 32], strides = [1, 1]} : vector<8x96xf32> to vector<8x32xf32>
    %58 = arith.mulf %54, %57 : vector<8x32xf32>
    %59 = arith.addf %56, %58 : vector<8x32xf32>
    %60 = math.tanh %59 : vector<8x32xf32>
    %cst_20 = arith.constant 1.000000e+00 : f32
    %61 = vector.broadcast %cst_20 : f32 to vector<8x32xf32>
    %62 = arith.subf %61, %55 : vector<8x32xf32>
    %63 = arith.mulf %62, %60 : vector<8x32xf32>
    %64 = arith.mulf %55, %37 : vector<8x32xf32>
    %65 = arith.addf %63, %64 : vector<8x32xf32>
    %c2_i32 = arith.constant 2 : i32
    %c8_i32_21 = arith.constant 8 : i32
    %66 = arith.muli %c2_i32, %c8_i32_21 : i32
    %67 = tpu.assume_multiple %66, 8 : i32
    %68 = arith.index_cast %67 : i32 to index
    %c0_22 = arith.constant 0 : index
    %69 = vector.load %arg7[%68, %c0_22] : memref<64x96xf32, #tpu.memory_space<vmem>>, vector<8x96xf32>
    %70 = arith.truncf %65 : vector<8x32xf32> to vector<8x32xbf16>
    %cst_23 = arith.constant dense<0.000000e+00> : vector<8x96xf32>
    %71 = tpu.matmul %70, %7, %cst_23 {dimension_numbers = #tpu.dot_dimension_numbers<[1], [0], [0], [1], [0, 0, 1, 1], [], []>} : vector<8x32xbf16>, vector<32x96xbf16>, vector<8x96xf32> -> vector<8x96xf32>
    %72 = vector.broadcast %8 : vector<1x96xf32> to vector<8x96xf32>
    %73 = arith.addf %71, %72 : vector<8x96xf32>
    %74 = vector.extract_strided_slice %69 {offsets = [0, 0], sizes = [8, 64], strides = [1, 1]} : vector<8x96xf32> to vector<8x64xf32>
    %75 = vector.extract_strided_slice %73 {offsets = [0, 0], sizes = [8, 64], strides = [1, 1]} : vector<8x96xf32> to vector<8x64xf32>
    %76 = arith.addf %74, %75 : vector<8x64xf32>
    %77 = arith.negf %76 : vector<8x64xf32>
    %78 = math.exp %77 : vector<8x64xf32>
    %cst_24 = arith.constant 1.000000e+00 : f32
    %79 = vector.broadcast %cst_24 : f32 to vector<8x64xf32>
    %80 = arith.addf %79, %78 : vector<8x64xf32>
    %81 = arith.divf %79, %80 : vector<8x64xf32>
    %82 = vector.extract_strided_slice %81 {offsets = [0, 0], sizes = [8, 32], strides = [1, 1]} : vector<8x64xf32> to vector<8x32xf32>
    %83 = vector.extract_strided_slice %81 {offsets = [0, 32], sizes = [8, 32], strides = [1, 1]} : vector<8x64xf32> to vector<8x32xf32>
    %84 = vector.extract_strided_slice %69 {offsets = [0, 64], sizes = [8, 32], strides = [1, 1]} : vector<8x96xf32> to vector<8x32xf32>
    %85 = vector.extract_strided_slice %73 {offsets = [0, 64], sizes = [8, 32], strides = [1, 1]} : vector<8x96xf32> to vector<8x32xf32>
    %86 = arith.mulf %82, %85 : vector<8x32xf32>
    %87 = arith.addf %84, %86 : vector<8x32xf32>
    %88 = math.tanh %87 : vector<8x32xf32>
    %cst_25 = arith.constant 1.000000e+00 : f32
    %89 = vector.broadcast %cst_25 : f32 to vector<8x32xf32>
    %90 = arith.subf %89, %83 : vector<8x32xf32>
    %91 = arith.mulf %90, %88 : vector<8x32xf32>
    %92 = arith.mulf %83, %65 : vector<8x32xf32>
    %93 = arith.addf %91, %92 : vector<8x32xf32>
    %c3_i32 = arith.constant 3 : i32
    %c8_i32_26 = arith.constant 8 : i32
    %94 = arith.muli %c3_i32, %c8_i32_26 : i32
    %95 = tpu.assume_multiple %94, 8 : i32
    %96 = arith.index_cast %95 : i32 to index
    %c0_27 = arith.constant 0 : index
    %97 = vector.load %arg7[%96, %c0_27] : memref<64x96xf32, #tpu.memory_space<vmem>>, vector<8x96xf32>
    %98 = arith.truncf %93 : vector<8x32xf32> to vector<8x32xbf16>
    %cst_28 = arith.constant dense<0.000000e+00> : vector<8x96xf32>
    %99 = tpu.matmul %98, %7, %cst_28 {dimension_numbers = #tpu.dot_dimension_numbers<[1], [0], [0], [1], [0, 0, 1, 1], [], []>} : vector<8x32xbf16>, vector<32x96xbf16>, vector<8x96xf32> -> vector<8x96xf32>
    %100 = vector.broadcast %8 : vector<1x96xf32> to vector<8x96xf32>
    %101 = arith.addf %99, %100 : vector<8x96xf32>
    %102 = vector.extract_strided_slice %97 {offsets = [0, 0], sizes = [8, 64], strides = [1, 1]} : vector<8x96xf32> to vector<8x64xf32>
    %103 = vector.extract_strided_slice %101 {offsets = [0, 0], sizes = [8, 64], strides = [1, 1]} : vector<8x96xf32> to vector<8x64xf32>
    %104 = arith.addf %102, %103 : vector<8x64xf32>
    %105 = arith.negf %104 : vector<8x64xf32>
    %106 = math.exp %105 : vector<8x64xf32>
    %cst_29 = arith.constant 1.000000e+00 : f32
    %107 = vector.broadcast %cst_29 : f32 to vector<8x64xf32>
    %108 = arith.addf %107, %106 : vector<8x64xf32>
    %109 = arith.divf %107, %108 : vector<8x64xf32>
    %110 = vector.extract_strided_slice %109 {offsets = [0, 0], sizes = [8, 32], strides = [1, 1]} : vector<8x64xf32> to vector<8x32xf32>
    %111 = vector.extract_strided_slice %109 {offsets = [0, 32], sizes = [8, 32], strides = [1, 1]} : vector<8x64xf32> to vector<8x32xf32>
    %112 = vector.extract_strided_slice %97 {offsets = [0, 64], sizes = [8, 32], strides = [1, 1]} : vector<8x96xf32> to vector<8x32xf32>
    %113 = vector.extract_strided_slice %101 {offsets = [0, 64], sizes = [8, 32], strides = [1, 1]} : vector<8x96xf32> to vector<8x32xf32>
    %114 = arith.mulf %110, %113 : vector<8x32xf32>
    %115 = arith.addf %112, %114 : vector<8x32xf32>
    %116 = math.tanh %115 : vector<8x32xf32>
    %cst_30 = arith.constant 1.000000e+00 : f32
    %117 = vector.broadcast %cst_30 : f32 to vector<8x32xf32>
    %118 = arith.subf %117, %111 : vector<8x32xf32>
    %119 = arith.mulf %118, %116 : vector<8x32xf32>
    %120 = arith.mulf %111, %93 : vector<8x32xf32>
    %121 = arith.addf %119, %120 : vector<8x32xf32>
    %c4_i32 = arith.constant 4 : i32
    %c8_i32_31 = arith.constant 8 : i32
    %122 = arith.muli %c4_i32, %c8_i32_31 : i32
    %123 = tpu.assume_multiple %122, 8 : i32
    %124 = arith.index_cast %123 : i32 to index
    %c0_32 = arith.constant 0 : index
    %125 = vector.load %arg7[%124, %c0_32] : memref<64x96xf32, #tpu.memory_space<vmem>>, vector<8x96xf32>
    %126 = arith.truncf %121 : vector<8x32xf32> to vector<8x32xbf16>
    %cst_33 = arith.constant dense<0.000000e+00> : vector<8x96xf32>
    %127 = tpu.matmul %126, %7, %cst_33 {dimension_numbers = #tpu.dot_dimension_numbers<[1], [0], [0], [1], [0, 0, 1, 1], [], []>} : vector<8x32xbf16>, vector<32x96xbf16>, vector<8x96xf32> -> vector<8x96xf32>
    %128 = vector.broadcast %8 : vector<1x96xf32> to vector<8x96xf32>
    %129 = arith.addf %127, %128 : vector<8x96xf32>
    %130 = vector.extract_strided_slice %125 {offsets = [0, 0], sizes = [8, 64], strides = [1, 1]} : vector<8x96xf32> to vector<8x64xf32>
    %131 = vector.extract_strided_slice %129 {offsets = [0, 0], sizes = [8, 64], strides = [1, 1]} : vector<8x96xf32> to vector<8x64xf32>
    %132 = arith.addf %130, %131 : vector<8x64xf32>
    %133 = arith.negf %132 : vector<8x64xf32>
    %134 = math.exp %133 : vector<8x64xf32>
    %cst_34 = arith.constant 1.000000e+00 : f32
    %135 = vector.broadcast %cst_34 : f32 to vector<8x64xf32>
    %136 = arith.addf %135, %134 : vector<8x64xf32>
    %137 = arith.divf %135, %136 : vector<8x64xf32>
    %138 = vector.extract_strided_slice %137 {offsets = [0, 0], sizes = [8, 32], strides = [1, 1]} : vector<8x64xf32> to vector<8x32xf32>
    %139 = vector.extract_strided_slice %137 {offsets = [0, 32], sizes = [8, 32], strides = [1, 1]} : vector<8x64xf32> to vector<8x32xf32>
    %140 = vector.extract_strided_slice %125 {offsets = [0, 64], sizes = [8, 32], strides = [1, 1]} : vector<8x96xf32> to vector<8x32xf32>
    %141 = vector.extract_strided_slice %129 {offsets = [0, 64], sizes = [8, 32], strides = [1, 1]} : vector<8x96xf32> to vector<8x32xf32>
    %142 = arith.mulf %138, %141 : vector<8x32xf32>
    %143 = arith.addf %140, %142 : vector<8x32xf32>
    %144 = math.tanh %143 : vector<8x32xf32>
    %cst_35 = arith.constant 1.000000e+00 : f32
    %145 = vector.broadcast %cst_35 : f32 to vector<8x32xf32>
    %146 = arith.subf %145, %139 : vector<8x32xf32>
    %147 = arith.mulf %146, %144 : vector<8x32xf32>
    %148 = arith.mulf %139, %121 : vector<8x32xf32>
    %149 = arith.addf %147, %148 : vector<8x32xf32>
    %c5_i32 = arith.constant 5 : i32
    %c8_i32_36 = arith.constant 8 : i32
    %150 = arith.muli %c5_i32, %c8_i32_36 : i32
    %151 = tpu.assume_multiple %150, 8 : i32
    %152 = arith.index_cast %151 : i32 to index
    %c0_37 = arith.constant 0 : index
    %153 = vector.load %arg7[%152, %c0_37] : memref<64x96xf32, #tpu.memory_space<vmem>>, vector<8x96xf32>
    %154 = arith.truncf %149 : vector<8x32xf32> to vector<8x32xbf16>
    %cst_38 = arith.constant dense<0.000000e+00> : vector<8x96xf32>
    %155 = tpu.matmul %154, %7, %cst_38 {dimension_numbers = #tpu.dot_dimension_numbers<[1], [0], [0], [1], [0, 0, 1, 1], [], []>} : vector<8x32xbf16>, vector<32x96xbf16>, vector<8x96xf32> -> vector<8x96xf32>
    %156 = vector.broadcast %8 : vector<1x96xf32> to vector<8x96xf32>
    %157 = arith.addf %155, %156 : vector<8x96xf32>
    %158 = vector.extract_strided_slice %153 {offsets = [0, 0], sizes = [8, 64], strides = [1, 1]} : vector<8x96xf32> to vector<8x64xf32>
    %159 = vector.extract_strided_slice %157 {offsets = [0, 0], sizes = [8, 64], strides = [1, 1]} : vector<8x96xf32> to vector<8x64xf32>
    %160 = arith.addf %158, %159 : vector<8x64xf32>
    %161 = arith.negf %160 : vector<8x64xf32>
    %162 = math.exp %161 : vector<8x64xf32>
    %cst_39 = arith.constant 1.000000e+00 : f32
    %163 = vector.broadcast %cst_39 : f32 to vector<8x64xf32>
    %164 = arith.addf %163, %162 : vector<8x64xf32>
    %165 = arith.divf %163, %164 : vector<8x64xf32>
    %166 = vector.extract_strided_slice %165 {offsets = [0, 0], sizes = [8, 32], strides = [1, 1]} : vector<8x64xf32> to vector<8x32xf32>
    %167 = vector.extract_strided_slice %165 {offsets = [0, 32], sizes = [8, 32], strides = [1, 1]} : vector<8x64xf32> to vector<8x32xf32>
    %168 = vector.extract_strided_slice %153 {offsets = [0, 64], sizes = [8, 32], strides = [1, 1]} : vector<8x96xf32> to vector<8x32xf32>
    %169 = vector.extract_strided_slice %157 {offsets = [0, 64], sizes = [8, 32], strides = [1, 1]} : vector<8x96xf32> to vector<8x32xf32>
    %170 = arith.mulf %166, %169 : vector<8x32xf32>
    %171 = arith.addf %168, %170 : vector<8x32xf32>
    %172 = math.tanh %171 : vector<8x32xf32>
    %cst_40 = arith.constant 1.000000e+00 : f32
    %173 = vector.broadcast %cst_40 : f32 to vector<8x32xf32>
    %174 = arith.subf %173, %167 : vector<8x32xf32>
    %175 = arith.mulf %174, %172 : vector<8x32xf32>
    %176 = arith.mulf %167, %149 : vector<8x32xf32>
    %177 = arith.addf %175, %176 : vector<8x32xf32>
    %c6_i32 = arith.constant 6 : i32
    %c8_i32_41 = arith.constant 8 : i32
    %178 = arith.muli %c6_i32, %c8_i32_41 : i32
    %179 = tpu.assume_multiple %178, 8 : i32
    %180 = arith.index_cast %179 : i32 to index
    %c0_42 = arith.constant 0 : index
    %181 = vector.load %arg7[%180, %c0_42] : memref<64x96xf32, #tpu.memory_space<vmem>>, vector<8x96xf32>
    %182 = arith.truncf %177 : vector<8x32xf32> to vector<8x32xbf16>
    %cst_43 = arith.constant dense<0.000000e+00> : vector<8x96xf32>
    %183 = tpu.matmul %182, %7, %cst_43 {dimension_numbers = #tpu.dot_dimension_numbers<[1], [0], [0], [1], [0, 0, 1, 1], [], []>} : vector<8x32xbf16>, vector<32x96xbf16>, vector<8x96xf32> -> vector<8x96xf32>
    %184 = vector.broadcast %8 : vector<1x96xf32> to vector<8x96xf32>
    %185 = arith.addf %183, %184 : vector<8x96xf32>
    %186 = vector.extract_strided_slice %181 {offsets = [0, 0], sizes = [8, 64], strides = [1, 1]} : vector<8x96xf32> to vector<8x64xf32>
    %187 = vector.extract_strided_slice %185 {offsets = [0, 0], sizes = [8, 64], strides = [1, 1]} : vector<8x96xf32> to vector<8x64xf32>
    %188 = arith.addf %186, %187 : vector<8x64xf32>
    %189 = arith.negf %188 : vector<8x64xf32>
    %190 = math.exp %189 : vector<8x64xf32>
    %cst_44 = arith.constant 1.000000e+00 : f32
    %191 = vector.broadcast %cst_44 : f32 to vector<8x64xf32>
    %192 = arith.addf %191, %190 : vector<8x64xf32>
    %193 = arith.divf %191, %192 : vector<8x64xf32>
    %194 = vector.extract_strided_slice %193 {offsets = [0, 0], sizes = [8, 32], strides = [1, 1]} : vector<8x64xf32> to vector<8x32xf32>
    %195 = vector.extract_strided_slice %193 {offsets = [0, 32], sizes = [8, 32], strides = [1, 1]} : vector<8x64xf32> to vector<8x32xf32>
    %196 = vector.extract_strided_slice %181 {offsets = [0, 64], sizes = [8, 32], strides = [1, 1]} : vector<8x96xf32> to vector<8x32xf32>
    %197 = vector.extract_strided_slice %185 {offsets = [0, 64], sizes = [8, 32], strides = [1, 1]} : vector<8x96xf32> to vector<8x32xf32>
    %198 = arith.mulf %194, %197 : vector<8x32xf32>
    %199 = arith.addf %196, %198 : vector<8x32xf32>
    %200 = math.tanh %199 : vector<8x32xf32>
    %cst_45 = arith.constant 1.000000e+00 : f32
    %201 = vector.broadcast %cst_45 : f32 to vector<8x32xf32>
    %202 = arith.subf %201, %195 : vector<8x32xf32>
    %203 = arith.mulf %202, %200 : vector<8x32xf32>
    %204 = arith.mulf %195, %177 : vector<8x32xf32>
    %205 = arith.addf %203, %204 : vector<8x32xf32>
    %c7_i32 = arith.constant 7 : i32
    %c8_i32_46 = arith.constant 8 : i32
    %206 = arith.muli %c7_i32, %c8_i32_46 : i32
    %207 = tpu.assume_multiple %206, 8 : i32
    %208 = arith.index_cast %207 : i32 to index
    %c0_47 = arith.constant 0 : index
    %209 = vector.load %arg7[%208, %c0_47] : memref<64x96xf32, #tpu.memory_space<vmem>>, vector<8x96xf32>
    %210 = arith.truncf %205 : vector<8x32xf32> to vector<8x32xbf16>
    %cst_48 = arith.constant dense<0.000000e+00> : vector<8x96xf32>
    %211 = tpu.matmul %210, %7, %cst_48 {dimension_numbers = #tpu.dot_dimension_numbers<[1], [0], [0], [1], [0, 0, 1, 1], [], []>} : vector<8x32xbf16>, vector<32x96xbf16>, vector<8x96xf32> -> vector<8x96xf32>
    %212 = vector.broadcast %8 : vector<1x96xf32> to vector<8x96xf32>
    %213 = arith.addf %211, %212 : vector<8x96xf32>
    %214 = vector.extract_strided_slice %209 {offsets = [0, 0], sizes = [8, 64], strides = [1, 1]} : vector<8x96xf32> to vector<8x64xf32>
    %215 = vector.extract_strided_slice %213 {offsets = [0, 0], sizes = [8, 64], strides = [1, 1]} : vector<8x96xf32> to vector<8x64xf32>
    %216 = arith.addf %214, %215 : vector<8x64xf32>
    %217 = arith.negf %216 : vector<8x64xf32>
    %218 = math.exp %217 : vector<8x64xf32>
    %cst_49 = arith.constant 1.000000e+00 : f32
    %219 = vector.broadcast %cst_49 : f32 to vector<8x64xf32>
    %220 = arith.addf %219, %218 : vector<8x64xf32>
    %221 = arith.divf %219, %220 : vector<8x64xf32>
    %222 = vector.extract_strided_slice %221 {offsets = [0, 0], sizes = [8, 32], strides = [1, 1]} : vector<8x64xf32> to vector<8x32xf32>
    %223 = vector.extract_strided_slice %221 {offsets = [0, 32], sizes = [8, 32], strides = [1, 1]} : vector<8x64xf32> to vector<8x32xf32>
    %224 = vector.extract_strided_slice %209 {offsets = [0, 64], sizes = [8, 32], strides = [1, 1]} : vector<8x96xf32> to vector<8x32xf32>
    %225 = vector.extract_strided_slice %213 {offsets = [0, 64], sizes = [8, 32], strides = [1, 1]} : vector<8x96xf32> to vector<8x32xf32>
    %226 = arith.mulf %222, %225 : vector<8x32xf32>
    %227 = arith.addf %224, %226 : vector<8x32xf32>
    %228 = math.tanh %227 : vector<8x32xf32>
    %cst_50 = arith.constant 1.000000e+00 : f32
    %229 = vector.broadcast %cst_50 : f32 to vector<8x32xf32>
    %230 = arith.subf %229, %223 : vector<8x32xf32>
    %231 = arith.mulf %230, %228 : vector<8x32xf32>
    %232 = arith.mulf %223, %205 : vector<8x32xf32>
    %233 = arith.addf %231, %232 : vector<8x32xf32>
    %c8_i32_51 = arith.constant 8 : i32
    %c0_52 = arith.constant 0 : index
    %c0_53 = arith.constant 0 : index
    %234 = vector.load %arg6[%c0_52, %c0_53] : memref<8x32xf32, #tpu.memory_space<vmem>>, vector<8x32xf32>
    tpu.vector_store %arg6[%c0_52, %c0_53], %233 {strides = array<i32>} : memref<8x32xf32, #tpu.memory_space<vmem>>, vector<8x32xf32>,
    return
  }
  func.func @transform_0(%arg0: i32) -> (i32, i32) {
    %c0_i32 = arith.constant 0 : i32
    %c0_i32_0 = arith.constant 0 : i32
    %c0_i32_1 = arith.constant 0 : i32
    return %c0_i32, %c0_i32_0 : i32, i32
  }
  func.func @transform_1(%arg0: i32) -> (i32, i32) {
    %c0_i32 = arith.constant 0 : i32
    %c0_i32_0 = arith.constant 0 : i32
    %c0_i32_1 = arith.constant 0 : i32
    return %c0_i32, %c0_i32_0 : i32, i32
  }
  func.func @transform_2(%arg0: i32) -> (i32, i32) {
    %c0_i32 = arith.constant 0 : i32
    %c0_i32_0 = arith.constant 0 : i32
    %c0_i32_1 = arith.constant 0 : i32
    return %c0_i32, %c0_i32_0 : i32, i32
  }
  func.func @transform_3(%arg0: i32) -> (i32, i32) {
    %c0_i32 = arith.constant 0 : i32
    %c0_i32_0 = arith.constant 0 : i32
    %c0_i32_1 = arith.constant 0 : i32
    return %c0_i32, %c0_i32_0 : i32, i32
  }
  func.func @transform_4(%arg0: i32) -> (i32, i32) {
    %c0_i32 = arith.constant 0 : i32
    %c0_i32_0 = arith.constant 0 : i32
    %c0_i32_1 = arith.constant 0 : i32
    return %c0_i32, %c0_i32_0 : i32, i32
  }
  func.func @transform_5(%arg0: i32) -> (i32, i32) {
    %c0_i32 = arith.constant 0 : i32
    %c0_i32_0 = arith.constant 0 : i32
    %c0_i32_1 = arith.constant 0 : i32
    return %c0_i32, %c0_i32_0 : i32, i32
  }
}

</mosaic_0001>

<bundles_post_ra>
// kernel: tpu_custom_call.1
= control target key start
LH: loop header
LB: loop body
LE: loop exit
PB: predicated region body
PF: predicated region fallthrough
CT: control target
= control target key end

     0   :  { %vm62_vm0 = vcmask 130048   ;;  %s928_s0 = inlined_call_operand.vmem [shape: bf16[64,16], index: 0, kind: input, shape index: {}]   ;;  %s929_s1 = inlined_call_operand.vmem [shape: bf16[16,96], index: 1, kind: input, shape index: {}]   ;;  %s930_s2 = inlined_call_operand.vmem [shape: bf16[32,96], index: 2, kind: input, shape index: {}]   ;;  %s931_s3 = inlined_call_operand.vmem [shape: f32[1,96], index: 3, kind: input, shape index: {}]   ;;  %s932_s4 = inlined_call_operand.vmem [shape: f32[1,96], index: 4, kind: input, shape index: {}]   ;;  %s933_s5 = inlined_call_operand.hbm [shape: f32[8,32], index: 5, kind: output, shape index: {}]  }
   0x1   :  { %v689_v0 = vld [vmem:[%s929_s1] sm:$0xff]  ;;  %v812_v1 = vld [vmem:[%s930_s2 + $0x8] sm:$0xff] }
   0x2   :  { %v685_v2 = vld [vmem:[%s928_s0] sm:$0xff]  ;;  %82 = vmatpush.bf16.msra.mxu0 %v689_v0  ;;  %144 = vmatpush.bf16.msra.mxu1 %v812_v1 }
   0x3   :  { %v821_v3 = vld [vmem:[%s930_s2] sm:$0xff] }
   0x4   :  { %10 = vsyncpa [#allocation4], 0  ;;  %205 = vmatpush.bf16.msra.mxu2 %v812_v1  ;;  %266 = vmatpush.bf16.msra.mxu3 %v812_v1  ;;  %v772_v4 = vmov 0   ;;  %v840_v5 = vld [vmem:[%s931_s3] ss:$0 sm:$0xff]  ;;  %vm104_vm1 = vcmask 785408  }
   0x5   :  { %658 = vmatmul.msk.bf16.vlgmr.msra.gmra.mxu0 %vm62_vm0, %v685_v2  ;;  %v846_v8 = vld [vmem:[%s932_s4] ss:$0 sm:$0xff]  ;;  %s773_s28 = smov 64   ;;  %s774_s3 = smov 96   ;;  %vm134_vm6 = vcmask 261120   ;;  %v686_v0 = vld [vmem:[%s928_s0 + $0x8] sm:$0xff] }
   0x6   :  { %145 = vmatpush.bf16.msra.mxu1 %v821_v3  ;;  %s629_s12 = sshll.u32 %s933_s5, 4  ;;  %s630_s12 = int_to_ptr.hbm [resolvable:$true] %s629_s12 }
   0x8   :  { %206 = vmatpush.bf16.msra.mxu2 %v821_v3  ;;  %267 = vmatpush.bf16.msra.mxu3 %v821_v3 }
   0x9   :  { %146 = vmatmul.bf16.vlgmr.msra.gmra.mxu1 %v772_v4 }
   0xa   :  { %327 = vmatpush.bf16.msrb.mxu1 %v812_v1 }
   0xc   :  { %388 = vmatpush.bf16.msrb.mxu2 %v812_v1  ;;  %449 = vmatpush.bf16.msrb.mxu3 %v812_v1 }
   0xe   :  { %328 = vmatpush.bf16.msrb.mxu1 %v821_v3 }
  0x10   :  { %389 = vmatpush.bf16.msrb.mxu2 %v821_v3  ;;  %450 = vmatpush.bf16.msrb.mxu3 %v821_v3 }
  0x12   :  { %510 = vmatpush.bf16.msra.mxu1 %v812_v1 }
  0x15   :  { %659 = vmatmul.msk.bf16.gmra.mxu0 %vm62_vm0, %v686_v0 }
  0x16   :  { %511 = vmatpush.bf16.msra.mxu1 %v821_v3 }
  0x82   :  { %v84_v6 = vpop.f32.mrf.mxu0 }
  0x83   :  { %v85_v7 = vadd.f32 %v840_v5, %v84_v6 }
  0x85   :  { %105 = vst.msk [vmem:[#allocation2] sm:$0xff] %vm104_vm1, %v85_v7 }
  0x86   :  { %v147_v9 = vpop.f32.mrf.mxu1 }
  0x87   :  { %v148_v10 = vadd.f32 %v846_v8, %v147_v9 }
  0x89   :  { %172 = vrot.lane.b32.xlu0 %v148_v10, %s773_s28 }
  0x8a   :  { %v86_v11 = vpop.f32.mrf.mxu0 }
  0x8b   :  { %v87_v12 = vadd.f32 %v840_v5, %v86_v11 }
  0x8c   :  { %v118_v14 = vld [vmem:[#allocation2] sm:$0xff] }
  0x8d   :  { %106 = vst.msk [vmem:[#allocation2 + $0x8] sm:$0xff] %vm104_vm1, %v87_v12  ;;  %v151_v15 = vadd.f32 %v148_v10, %v118_v14 }
  0x8e   :  { %v149_v13 = vpop.f32.mrf.mxu1 }
  0x8f   :  { %v670_v16 = vmul.f32 -1.442695, %v151_v15 }
  0x91   :  { %698 = vpow2.f32 %v670_v16 }
  0x92   :  { %v89_v9 = vpop.f32.mrf.mxu0 }
  0x93   :  { %v90_v10 = vadd.f32 %v840_v5, %v89_v9 }
  0x94   :  { %v191_v44 = vld [vmem:[#allocation2 + $0x8] sm:$0xff] }
  0x95   :  { %107 = vst.msk [vmem:[#allocation2 + $0x10] sm:$0xff] %vm104_vm1, %v90_v10 }
  0x97   :  { %v699_v17 = vpop.eup %698 }
  0x98   :  { %v155_v18 = vadd.f32 1.0, %v699_v17 }
  0x9a   :  { %700 = vrcp.f32 %v155_v18  ;;  %v167_v24 = vand.u32 2147483648, %v155_v18  ;;  %vm161_vm3 = vweird.f32 %v155_v18  ;;  %v165_v25 = vand.u32 2147483647, %v155_v18  ;;  %v91_v12 = vpop.f32.mrf.mxu0 }
  0x9b   :  { %v92_v13 = vadd.f32 %v840_v5, %v91_v12 }
  0x9c   :  { %v168_v27 = vor.u32 1.1754944e-38, %v167_v24  ;;  %vm166_vm5 = vcmp.eq.f32.partialorder %v165_v25, 8.507059e+37  ;;  %v252_v17 = vld [vmem:[#allocation2 + $0x10] sm:$0xff] }
  0x9d   :  { %108 = vst.msk [vmem:[#allocation2 + $0x18] sm:$0xff] %vm104_vm1, %v92_v13 }
  0xa0   :  { %v701_v19 = vpop.eup %700 }
  0xa1   :  { %v157_v20 = vmul.f32 %v701_v19, %v155_v18  ;;  %vm162_vm2 = vweird.f32 %v701_v19 }
  0xa2   :  { %vm163_vm4 = vmor %vm161_vm3, %vm162_vm2 }
  0xa3   :  { %v158_v21 = vsub.f32 1.0, %v157_v20 }
  0xa5   :  { %v159_v22 = vmul.f32 %v701_v19, %v158_v21 }
  0xa7   :  { %v160_v23 = vadd.f32 %v701_v19, %v159_v22 }
  0xa9   :  { %v164_v26 = vsel %vm163_vm4, %v701_v19, %v160_v23 }
  0xaa   :  { %v169_v29 = vsel %vm166_vm5, %v168_v27, %v164_v26 }
  0xab   :  { %v182_v34 = vsub.f32 1.0, %v169_v29  ;;  %v188_v36 = vmul.f32 0.0, %v169_v29 }
  0xfb   :  { %v173_v28 = vpop.permute.xlu0 %172 }
  0xfc   :  { %v175_v30 = vmul.f32 %v173_v28, %v169_v29 }
  0xfe   :  { %177 = vrot.lane.b32.xlu0 %v175_v30, %s773_s28 }
 0x170   :  { %v178_v31 = vpop.permute.xlu0 %177 }
 0x171   :  { %v180_v32 = vadd.f32 %v178_v31, %v118_v14 }
 0x173   :  { %702 = vtanh.f32 %v180_v32 }
 0x179   :  { %v703_v33 = vpop.eup %702 }
 0x17a   :  { %184 = vrot.lane.b32.xlu1 %v703_v33, %s774_s3 }
 0x1ec   :  { %v185_v35 = vpop.permute.xlu1 %184 }
 0x1ed   :  { %v187_v37 = vmul.f32 %v185_v35, %v182_v34 }
 0x1ef   :  { %v189_v38 = vadd.f32 %v188_v36, %v187_v37 }
 0x1f1   :  { %v192_v39 = vpack.c.bf16 %v189_v38, %v189_v38 }
 0x1f3   :  { %194 = vrot.lane.b32.xlu1 %v192_v39, %s774_s3 }
 0x265   :  { %v195_v40 = vpop.permute.xlu1 %194 }
 0x266   :  { %671 = vmatmul.msk.bf16.vlgmr.msra.gmra.mxu2 %vm134_vm6, %v195_v40 }
 0x267   :  { %571 = vmatpush.bf16.msra.mxu2 %v812_v1 }
 0x26b   :  { %572 = vmatpush.bf16.msra.mxu2 %v821_v3 }
 0x2e9   :  { %v208_v41 = vpop.f32.mrf.mxu2 }
 0x2ea   :  { %v209_v42 = vadd.f32 %v846_v8, %v208_v41 }
 0x2ec   :  { %233 = vrot.lane.b32.xlu2 %v209_v42, %s773_s28  ;;  %v212_v45 = vadd.f32 %v209_v42, %v191_v44 }
 0x2ee   :  { %v672_v46 = vmul.f32 -1.442695, %v212_v45 }
 0x2f0   :  { %704 = vpow2.f32 %v672_v46 }
 0x2f1   :  { %v210_v43 = vpop.f32.mrf.mxu2 }
 0x2f6   :  { %v705_v47 = vpop.eup %704 }
 0x2f7   :  { %v216_v48 = vadd.f32 1.0, %v705_v47  ;;  %v313_v47 = vld [vmem:[#allocation2 + $0x18] sm:$0xff] }
 0x2f9   :  { %706 = vrcp.f32 %v216_v48  ;;  %v228_v54 = vand.u32 2147483648, %v216_v48  ;;  %vm222_vm8 = vweird.f32 %v216_v48  ;;  %v226_v55 = vand.u32 2147483647, %v216_v48 }
 0x2fb   :  { %v229_v57 = vor.u32 1.1754944e-38, %v228_v54  ;;  %vm227_vm10 = vcmp.eq.f32.partialorder %v226_v55, 8.507059e+37 }
 0x2ff   :  { %v707_v49 = vpop.eup %706 }
 0x300   :  { %v218_v50 = vmul.f32 %v707_v49, %v216_v48  ;;  %vm223_vm7 = vweird.f32 %v707_v49 }
 0x301   :  { %vm224_vm9 = vmor %vm222_vm8, %vm223_vm7 }
 0x302   :  { %v219_v51 = vsub.f32 1.0, %v218_v50 }
 0x304   :  { %v220_v52 = vmul.f32 %v707_v49, %v219_v51 }
 0x306   :  { %v221_v53 = vadd.f32 %v707_v49, %v220_v52 }
 0x308   :  { %v225_v56 = vsel %vm224_vm9, %v707_v49, %v221_v53 }
 0x309   :  { %v230_v59 = vsel %vm227_vm10, %v229_v57, %v225_v56 }
 0x30a   :  { %v243_v1 = vsub.f32 1.0, %v230_v59  ;;  %v249_v3 = vmul.f32 %v230_v59, %v189_v38 }
 0x346   :  { %v234_v58 = vpop.permute.xlu2 %233 }
 0x347   :  { %v236_v60 = vmul.f32 %v234_v58, %v230_v59 }
 0x349   :  { %238 = vrot.lane.b32.xlu2 %v236_v60, %s773_s28 }
 0x3a3   :  { %v239_v61 = vpop.permute.xlu2 %238 }
 0x3a4   :  { %v241_v62 = vadd.f32 %v239_v61, %v191_v44 }
 0x3a6   :  { %708 = vtanh.f32 %v241_v62 }
 0x3ac   :  { %v709_v63 = vpop.eup %708 }
 0x3ad   :  { %245 = vrot.lane.b32.xlu0 %v709_v63, %s774_s3 }
 0x41f   :  { %v246_v2 = vpop.permute.xlu0 %245 }
 0x420   :  { %v248_v4 = vmul.f32 %v246_v2, %v243_v1 }
 0x422   :  { %v250_v6 = vadd.f32 %v249_v3, %v248_v4  ;;  %v687_v3 = vld [vmem:[%s928_s0 + $0x10] sm:$0xff] }
 0x423   :  { %660 = vmatmul.msk.bf16.gmra.mxu0 %vm62_vm0, %v687_v3 }
 0x424   :  { %v253_v7 = vpack.c.bf16 %v250_v6, %v250_v6 }
 0x426   :  { %255 = vrot.lane.b32.xlu1 %v253_v7, %s774_s3 }
 0x498   :  { %v256_v11 = vpop.permute.xlu1 %255 }
 0x499   :  { %673 = vmatmul.msk.bf16.vlgmr.msra.gmra.mxu3 %vm134_vm6, %v256_v11 }
 0x4a0   :  { %v94_v12 = vpop.f32.mrf.mxu0 }
 0x4a1   :  { %v95_v13 = vadd.f32 %v840_v5, %v94_v12 }
 0x4a3   :  { %109 = vst.msk [vmem:[#allocation2 + $0x20] sm:$0xff] %vm104_vm1, %v95_v13 }
 0x51c   :  { %v269_v14 = vpop.f32.mrf.mxu3 }
 0x51d   :  { %v270_v15 = vadd.f32 %v846_v8, %v269_v14 }
 0x51f   :  { %294 = vrot.lane.b32.xlu2 %v270_v15, %s773_s28  ;;  %v273_v18 = vadd.f32 %v270_v15, %v252_v17  ;;  %v96_v15 = vpop.f32.mrf.mxu0 }
 0x521   :  { %v674_v19 = vmul.f32 -1.442695, %v273_v18 }
 0x523   :  { %710 = vpow2.f32 %v674_v19 }
 0x524   :  { %v271_v16 = vpop.f32.mrf.mxu3 }
 0x525   :  { %v97_v16 = vadd.f32 %v840_v5, %v96_v15 }
 0x527   :  { %110 = vst.msk [vmem:[#allocation2 + $0x28] sm:$0xff] %vm104_vm1, %v97_v16 }
 0x529   :  { %v711_v20 = vpop.eup %710 }
 0x52a   :  { %v277_v21 = vadd.f32 1.0, %v711_v20  ;;  %v374_v20 = vld [vmem:[#allocation2 + $0x20] sm:$0xff] }
 0x52c   :  { %712 = vrcp.f32 %v277_v21  ;;  %v289_v27 = vand.u32 2147483648, %v277_v21  ;;  %vm283_vm12 = vweird.f32 %v277_v21  ;;  %v287_v28 = vand.u32 2147483647, %v277_v21 }
 0x52e   :  { %v290_v30 = vor.u32 1.1754944e-38, %v289_v27  ;;  %vm288_vm14 = vcmp.eq.f32.partialorder %v287_v28, 8.507059e+37 }
 0x532   :  { %v713_v22 = vpop.eup %712 }
 0x533   :  { %v279_v23 = vmul.f32 %v713_v22, %v277_v21  ;;  %vm284_vm11 = vweird.f32 %v713_v22 }
 0x534   :  { %vm285_vm13 = vmor %vm283_vm12, %vm284_vm11 }
 0x535   :  { %v280_v24 = vsub.f32 1.0, %v279_v23 }
 0x537   :  { %v281_v25 = vmul.f32 %v713_v22, %v280_v24 }
 0x539   :  { %v282_v26 = vadd.f32 %v713_v22, %v281_v25 }
 0x53b   :  { %v286_v29 = vsel %vm285_vm13, %v713_v22, %v282_v26 }
 0x53c   :  { %v291_v32 = vsel %vm288_vm14, %v290_v30, %v286_v29 }
 0x53d   :  { %v304_v37 = vsub.f32 1.0, %v291_v32  ;;  %v310_v39 = vmul.f32 %v291_v32, %v250_v6 }
 0x579   :  { %v295_v31 = vpop.permute.xlu2 %294 }
 0x57a   :  { %v297_v33 = vmul.f32 %v295_v31, %v291_v32 }
 0x57c   :  { %299 = vrot.lane.b32.xlu0 %v297_v33, %s773_s28 }
 0x5ee   :  { %v300_v34 = vpop.permute.xlu0 %299 }
 0x5ef   :  { %v302_v35 = vadd.f32 %v300_v34, %v252_v17 }
 0x5f1   :  { %714 = vtanh.f32 %v302_v35 }
 0x5f7   :  { %v715_v36 = vpop.eup %714 }
 0x5f8   :  { %306 = vrot.lane.b32.xlu1 %v715_v36, %s774_s3 }
 0x66a   :  { %v307_v38 = vpop.permute.xlu1 %306 }
 0x66b   :  { %v309_v40 = vmul.f32 %v307_v38, %v304_v37 }
 0x66d   :  { %v311_v41 = vadd.f32 %v310_v39, %v309_v40 }
 0x66f   :  { %v314_v42 = vpack.c.bf16 %v311_v41, %v311_v41 }
 0x671   :  { %316 = vrot.lane.b32.xlu2 %v314_v42, %s774_s3 }
 0x6cb   :  { %v317_v43 = vpop.permute.xlu2 %316 }
 0x6cc   :  { %675 = vmatmul.msk.bf16.vlgmr.msrb.gmra.mxu1 %vm134_vm6, %v317_v43 }
 0x749   :  { %v330_v44 = vpop.f32.mrf.mxu1 }
 0x74a   :  { %v331_v45 = vadd.f32 %v846_v8, %v330_v44 }
 0x74c   :  { %355 = vrot.lane.b32.xlu0 %v331_v45, %s773_s28  ;;  %v334_v48 = vadd.f32 %v331_v45, %v313_v47 }
 0x74e   :  { %v676_v49 = vmul.f32 -1.442695, %v334_v48 }
 0x750   :  { %716 = vpow2.f32 %v676_v49 }
 0x751   :  { %v332_v46 = vpop.f32.mrf.mxu1 }
 0x756   :  { %v717_v50 = vpop.eup %716 }
 0x757   :  { %v338_v51 = vadd.f32 1.0, %v717_v50  ;;  %v435_v50 = vld [vmem:[#allocation2 + $0x28] sm:$0xff] }
 0x759   :  { %718 = vrcp.f32 %v338_v51  ;;  %v350_v57 = vand.u32 2147483648, %v338_v51  ;;  %vm344_vm2 = vweird.f32 %v338_v51  ;;  %v348_v58 = vand.u32 2147483647, %v338_v51 }
 0x75b   :  { %v351_v60 = vor.u32 1.1754944e-38, %v350_v57  ;;  %vm349_vm4 = vcmp.eq.f32.partialorder %v348_v58, 8.507059e+37 }
 0x75f   :  { %v719_v52 = vpop.eup %718 }
 0x760   :  { %v340_v53 = vmul.f32 %v719_v52, %v338_v51  ;;  %vm345_vm15 = vweird.f32 %v719_v52 }
 0x761   :  { %vm346_vm3 = vmor %vm344_vm2, %vm345_vm15 }
 0x762   :  { %v341_v54 = vsub.f32 1.0, %v340_v53 }
 0x764   :  { %v342_v55 = vmul.f32 %v719_v52, %v341_v54 }
 0x766   :  { %v343_v56 = vadd.f32 %v719_v52, %v342_v55 }
 0x768   :  { %v347_v59 = vsel %vm346_vm3, %v719_v52, %v343_v56 }
 0x769   :  { %v352_v62 = vsel %vm349_vm4, %v351_v60, %v347_v59 }
 0x76a   :  { %v365_v4 = vsub.f32 1.0, %v352_v62  ;;  %v371_v7 = vmul.f32 %v352_v62, %v311_v41 }
 0x7be   :  { %v356_v61 = vpop.permute.xlu0 %355 }
 0x7bf   :  { %v358_v63 = vmul.f32 %v356_v61, %v352_v62 }
 0x7c1   :  { %360 = vrot.lane.b32.xlu1 %v358_v63, %s773_s28 }
 0x833   :  { %v361_v0 = vpop.permute.xlu1 %360 }
 0x834   :  { %v363_v1 = vadd.f32 %v361_v0, %v313_v47 }
 0x836   :  { %720 = vtanh.f32 %v363_v1 }
 0x83c   :  { %v721_v2 = vpop.eup %720 }
 0x83d   :  { %367 = vrot.lane.b32.xlu2 %v721_v2, %s774_s3 }
 0x897   :  { %v368_v6 = vpop.permute.xlu2 %367 }
 0x898   :  { %v370_v9 = vmul.f32 %v368_v6, %v365_v4 }
 0x89a   :  { %v372_v10 = vadd.f32 %v371_v7, %v370_v9  ;;  %v688_v7 = vld [vmem:[%s928_s0 + $0x18] sm:$0xff]  ;;  %s775_s0 = smov [#allocation3]  }
 0x89b   :  { %661 = vmatmul.msk.bf16.gmra.mxu0 %vm62_vm0, %v688_v7  ;;  %s627_s9 = sshll.u32 %s775_s0, 4  ;;  %s628_s9 = int_to_ptr.vmem [resolvable:$true] %s627_s9 }
 0x89c   :  { %v375_v11 = vpack.c.bf16 %v372_v10, %v372_v10 }
 0x89e   :  { %377 = vrot.lane.b32.xlu0 %v375_v11, %s774_s3 }
 0x910   :  { %v378_v14 = vpop.permute.xlu0 %377 }
 0x911   :  { %677 = vmatmul.msk.bf16.vlgmr.msrb.gmra.mxu2 %vm134_vm6, %v378_v14 }
 0x918   :  { %v99_v16 = vpop.f32.mrf.mxu0 }
 0x994   :  { %v391_v17 = vpop.f32.mrf.mxu2 }
 0x995   :  { %v392_v18 = vadd.f32 %v846_v8, %v391_v17  ;;  %v100_v17 = vadd.f32 %v840_v5, %v99_v16 }
 0x997   :  { %416 = vrot.lane.b32.xlu1 %v392_v18, %s773_s28  ;;  %v395_v21 = vadd.f32 %v392_v18, %v374_v20  ;;  %111 = vst.msk [vmem:[#allocation2 + $0x30] sm:$0xff] %vm104_vm1, %v100_v17  ;;  %v101_v18 = vpop.f32.mrf.mxu0 }
 0x999   :  { %v678_v22 = vmul.f32 -1.442695, %v395_v21 }
 0x99b   :  { %722 = vpow2.f32 %v678_v22 }
 0x99c   :  { %v393_v19 = vpop.f32.mrf.mxu2 }
 0x99d   :  { %v102_v19 = vadd.f32 %v840_v5, %v101_v18 }
 0x99f   :  { %112 = vst.msk [vmem:[#allocation2 + $0x38] sm:$0xff] %vm104_vm1, %v102_v19 }
 0x9a1   :  { %v723_v23 = vpop.eup %722 }
 0x9a2   :  { %v399_v24 = vadd.f32 1.0, %v723_v23  ;;  %v496_v23 = vld [vmem:[#allocation2 + $0x30] sm:$0xff] }
 0x9a4   :  { %724 = vrcp.f32 %v399_v24  ;;  %v411_v30 = vand.u32 2147483648, %v399_v24  ;;  %vm405_vm7 = vweird.f32 %v399_v24  ;;  %v409_v31 = vand.u32 2147483647, %v399_v24 }
 0x9a6   :  { %v412_v33 = vor.u32 1.1754944e-38, %v411_v30  ;;  %vm410_vm9 = vcmp.eq.f32.partialorder %v409_v31, 8.507059e+37 }
 0x9aa   :  { %v725_v25 = vpop.eup %724 }
 0x9ab   :  { %v401_v26 = vmul.f32 %v725_v25, %v399_v24  ;;  %vm406_vm5 = vweird.f32 %v725_v25 }
 0x9ac   :  { %vm407_vm8 = vmor %vm405_vm7, %vm406_vm5 }
 0x9ad   :  { %v402_v27 = vsub.f32 1.0, %v401_v26 }
 0x9af   :  { %v403_v28 = vmul.f32 %v725_v25, %v402_v27 }
 0x9b1   :  { %v404_v29 = vadd.f32 %v725_v25, %v403_v28 }
 0x9b3   :  { %v408_v32 = vsel %vm407_vm8, %v725_v25, %v404_v29 }
 0x9b4   :  { %v413_v35 = vsel %vm410_vm9, %v412_v33, %v408_v32 }
 0x9b5   :  { %v426_v40 = vsub.f32 1.0, %v413_v35  ;;  %v432_v42 = vmul.f32 %v413_v35, %v372_v10 }
 0xa09   :  { %v417_v34 = vpop.permute.xlu1 %416 }
 0xa0a   :  { %v419_v36 = vmul.f32 %v417_v34, %v413_v35 }
 0xa0c   :  { %421 = vrot.lane.b32.xlu2 %v419_v36, %s773_s28 }
 0xa66   :  { %v422_v37 = vpop.permute.xlu2 %421 }
 0xa67   :  { %v424_v38 = vadd.f32 %v422_v37, %v374_v20 }
 0xa69   :  { %726 = vtanh.f32 %v424_v38 }
 0xa6f   :  { %v727_v39 = vpop.eup %726 }
 0xa70   :  { %428 = vrot.lane.b32.xlu0 %v727_v39, %s774_s3 }
 0xae2   :  { %v429_v41 = vpop.permute.xlu0 %428 }
 0xae3   :  { %v431_v43 = vmul.f32 %v429_v41, %v426_v40 }
 0xae5   :  { %v433_v44 = vadd.f32 %v432_v42, %v431_v43 }
 0xae7   :  { %v436_v45 = vpack.c.bf16 %v433_v44, %v433_v44 }
 0xae9   :  { %438 = vrot.lane.b32.xlu1 %v436_v45, %s774_s3 }
 0xb5b   :  { %v439_v46 = vpop.permute.xlu1 %438 }
 0xb5c   :  { %679 = vmatmul.msk.bf16.vlgmr.msrb.gmra.mxu3 %vm134_vm6, %v439_v46 }
 0xbdf   :  { %v452_v47 = vpop.f32.mrf.mxu3 }
 0xbe0   :  { %v453_v48 = vadd.f32 %v846_v8, %v452_v47 }
 0xbe2   :  { %477 = vrot.lane.b32.xlu2 %v453_v48, %s773_s28  ;;  %v456_v51 = vadd.f32 %v453_v48, %v435_v50 }
 0xbe4   :  { %v680_v52 = vmul.f32 -1.442695, %v456_v51 }
 0xbe6   :  { %728 = vpow2.f32 %v680_v52  ;;  %v557_v52 = vld [vmem:[#allocation2 + $0x38] sm:$0xff] }
 0xbe7   :  { %v454_v49 = vpop.f32.mrf.mxu3 }
 0xbec   :  { %v729_v53 = vpop.eup %728 }
 0xbed   :  { %v460_v54 = vadd.f32 1.0, %v729_v53 }
 0xbef   :  { %730 = vrcp.f32 %v460_v54  ;;  %v472_v60 = vand.u32 2147483648, %v460_v54  ;;  %vm466_vm11 = vweird.f32 %v460_v54  ;;  %v470_v61 = vand.u32 2147483647, %v460_v54 }
 0xbf1   :  { %v473_v63 = vor.u32 1.1754944e-38, %v472_v60  ;;  %vm471_vm13 = vcmp.eq.f32.partialorder %v470_v61, 8.507059e+37 }
 0xbf5   :  { %v731_v55 = vpop.eup %730 }
 0xbf6   :  { %v462_v56 = vmul.f32 %v731_v55, %v460_v54  ;;  %vm467_vm10 = vweird.f32 %v731_v55 }
 0xbf7   :  { %vm468_vm12 = vmor %vm466_vm11, %vm467_vm10 }
 0xbf8   :  { %v463_v57 = vsub.f32 1.0, %v462_v56 }
 0xbfa   :  { %v464_v58 = vmul.f32 %v731_v55, %v463_v57 }
 0xbfc   :  { %v465_v59 = vadd.f32 %v731_v55, %v464_v58 }
 0xbfe   :  { %v469_v62 = vsel %vm468_vm12, %v731_v55, %v465_v59 }
 0xbff   :  { %v474_v1 = vsel %vm471_vm13, %v473_v63, %v469_v62 }
 0xc00   :  { %v487_v9 = vsub.f32 1.0, %v474_v1  ;;  %v493_v11 = vmul.f32 %v474_v1, %v433_v44 }
 0xc3c   :  { %v478_v0 = vpop.permute.xlu2 %477 }
 0xc3d   :  { %v480_v2 = vmul.f32 %v478_v0, %v474_v1 }
 0xc3f   :  { %482 = vrot.lane.b32.xlu0 %v480_v2, %s773_s28 }
 0xcb1   :  { %v483_v3 = vpop.permute.xlu0 %482 }
 0xcb2   :  { %v485_v4 = vadd.f32 %v483_v3, %v435_v50 }
 0xcb4   :  { %732 = vtanh.f32 %v485_v4 }
 0xcba   :  { %v733_v6 = vpop.eup %732 }
 0xcbb   :  { %489 = vrot.lane.b32.xlu1 %v733_v6, %s774_s3 }
 0xd2d   :  { %v490_v10 = vpop.permute.xlu1 %489 }
 0xd2e   :  { %v492_v12 = vmul.f32 %v490_v10, %v487_v9 }
 0xd30   :  { %v494_v13 = vadd.f32 %v493_v11, %v492_v12 }
 0xd32   :  { %v497_v14 = vpack.c.bf16 %v494_v13, %v494_v13 }
 0xd34   :  { %499 = vrot.lane.b32.xlu2 %v497_v14, %s774_s3 }
 0xd8e   :  { %v500_v15 = vpop.permute.xlu2 %499 }
 0xd8f   :  { %681 = vmatmul.msk.bf16.vlgmr.msra.gmra.mxu1 %vm134_vm6, %v500_v15 }
 0xe0c   :  { %v513_v20 = vpop.f32.mrf.mxu1 }
 0xe0d   :  { %v514_v21 = vadd.f32 %v846_v8, %v513_v20 }
 0xe0f   :  { %538 = vrot.lane.b32.xlu0 %v514_v21, %s773_s28  ;;  %v517_v24 = vadd.f32 %v514_v21, %v496_v23 }
 0xe11   :  { %v682_v25 = vmul.f32 -1.442695, %v517_v24 }
 0xe13   :  { %734 = vpow2.f32 %v682_v25 }
 0xe14   :  { %v515_v22 = vpop.f32.mrf.mxu1 }
 0xe19   :  { %v735_v26 = vpop.eup %734 }
 0xe1a   :  { %v521_v27 = vadd.f32 1.0, %v735_v26 }
 0xe1c   :  { %736 = vrcp.f32 %v521_v27  ;;  %v533_v32 = vand.u32 2147483648, %v521_v27  ;;  %vm527_vm1 = vweird.f32 %v521_v27  ;;  %v531_v33 = vand.u32 2147483647, %v521_v27 }
 0xe1e   :  { %v534_v35 = vor.u32 1.1754944e-38, %v533_v32  ;;  %vm532_vm15 = vcmp.eq.f32.partialorder %v531_v33, 8.507059e+37 }
 0xe22   :  { %v737_v28 = vpop.eup %736 }
 0xe23   :  { %v523_v29 = vmul.f32 %v737_v28, %v521_v27  ;;  %vm528_vm0 = vweird.f32 %v737_v28 }
 0xe24   :  { %vm529_vm14 = vmor %vm527_vm1, %vm528_vm0 }
 0xe25   :  { %v524_v30 = vsub.f32 1.0, %v523_v29 }
 0xe27   :  { %v525_v31 = vmul.f32 %v737_v28, %v524_v30 }
 0xe29   :  { %v526_v5 = vadd.f32 %v737_v28, %v525_v31 }
 0xe2b   :  { %v530_v34 = vsel %vm529_vm14, %v737_v28, %v526_v5 }
 0xe2c   :  { %v535_v37 = vsel %vm532_vm15, %v534_v35, %v530_v34 }
 0xe2d   :  { %v548_v42 = vsub.f32 1.0, %v535_v37  ;;  %v554_v44 = vmul.f32 %v535_v37, %v494_v13 }
 0xe81   :  { %v539_v36 = vpop.permute.xlu0 %538 }
 0xe82   :  { %v541_v38 = vmul.f32 %v539_v36, %v535_v37 }
 0xe84   :  { %543 = vrot.lane.b32.xlu1 %v541_v38, %s773_s28 }
 0xef6   :  { %v544_v39 = vpop.permute.xlu1 %543 }
 0xef7   :  { %v546_v40 = vadd.f32 %v544_v39, %v496_v23 }
 0xef9   :  { %738 = vtanh.f32 %v546_v40 }
 0xeff   :  { %v739_v41 = vpop.eup %738 }
 0xf00   :  { %550 = vrot.lane.b32.xlu2 %v739_v41, %s774_s3 }
 0xf5a   :  { %v551_v43 = vpop.permute.xlu2 %550 }
 0xf5b   :  { %v553_v45 = vmul.f32 %v551_v43, %v548_v42 }
 0xf5d   :  { %v555_v46 = vadd.f32 %v554_v44, %v553_v45 }
 0xf5f   :  { %v558_v47 = vpack.c.bf16 %v555_v46, %v555_v46 }
 0xf61   :  { %560 = vrot.lane.b32.xlu0 %v558_v47, %s774_s3 }
 0xfd3   :  { %v561_v48 = vpop.permute.xlu0 %560 }
 0xfd4   :  { %683 = vmatmul.msk.bf16.vlgmr.msra.gmra.mxu2 %vm134_vm6, %v561_v48 }
0x1057   :  { %v574_v49 = vpop.f32.mrf.mxu2 }
0x1058   :  { %v575_v50 = vadd.f32 %v846_v8, %v574_v49 }
0x105a   :  { %599 = vrot.lane.b32.xlu1 %v575_v50, %s773_s28  ;;  %v578_v53 = vadd.f32 %v575_v50, %v557_v52 }
0x105c   :  { %v684_v54 = vmul.f32 -1.442695, %v578_v53 }
0x105e   :  { %740 = vpow2.f32 %v684_v54 }
0x105f   :  { %v576_v51 = vpop.f32.mrf.mxu2 }
0x1064   :  { %v741_v55 = vpop.eup %740 }
0x1065   :  { %v582_v56 = vadd.f32 1.0, %v741_v55 }
0x1067   :  { %742 = vrcp.f32 %v582_v56  ;;  %v594_v62 = vand.u32 2147483648, %v582_v56  ;;  %vm588_vm3 = vweird.f32 %v582_v56  ;;  %v592_v63 = vand.u32 2147483647, %v582_v56 }
0x1069   :  { %v595_v0 = vor.u32 1.1754944e-38, %v594_v62  ;;  %vm593_vm5 = vcmp.eq.f32.partialorder %v592_v63, 8.507059e+37 }
0x106d   :  { %v743_v57 = vpop.eup %742 }
0x106e   :  { %v584_v58 = vmul.f32 %v743_v57, %v582_v56  ;;  %vm589_vm2 = vweird.f32 %v743_v57 }
0x106f   :  { %vm590_vm4 = vmor %vm588_vm3, %vm589_vm2 }
0x1070   :  { %v585_v59 = vsub.f32 1.0, %v584_v58 }
0x1072   :  { %v586_v60 = vmul.f32 %v743_v57, %v585_v59 }
0x1074   :  { %v587_v61 = vadd.f32 %v743_v57, %v586_v60 }
0x1076   :  { %v591_v8 = vsel %vm590_vm4, %v743_v57, %v587_v61 }
0x1077   :  { %v596_v2 = vsel %vm593_vm5, %v595_v0, %v591_v8 }
0x1078   :  { %v609_v9 = vsub.f32 1.0, %v596_v2  ;;  %v615_v11 = vmul.f32 %v596_v2, %v555_v46 }
0x10cc   :  { %v600_v1 = vpop.permute.xlu1 %599 }
0x10cd   :  { %v602_v3 = vmul.f32 %v600_v1, %v596_v2 }
0x10cf   :  { %604 = vrot.lane.b32.xlu2 %v602_v3, %s773_s28 }
0x1129   :  { %v605_v4 = vpop.permute.xlu2 %604 }
0x112a   :  { %v607_v6 = vadd.f32 %v605_v4, %v557_v52 }
0x112c   :  { %744 = vtanh.f32 %v607_v6 }
0x1132   :  { %v745_v7 = vpop.eup %744 }
0x1133   :  { %611 = vrot.lane.b32.xlu0 %v745_v7, %s774_s3 }
0x11a5   :  { %v612_v10 = vpop.permute.xlu0 %611 }
0x11a6   :  { %v614_v12 = vmul.f32 %v612_v10, %v609_v9 }
0x11a8   :  { %v616_v13 = vadd.f32 %v615_v11, %v614_v12 }
0x11aa   :  { %618 = vrot.lane.b32.xlu1 %v616_v13, %s774_s3 }
0x121c   :  { %v619_v14 = vpop.permute.xlu1 %618 }
0x121d   :  { %621 = vst.msk [vmem:[#allocation3] sm:$0xff] %vm134_vm6, %v619_v14 }
0x121e   :  { %632 = dma.vmem_to_hbm [thread:$0]  %s628_s9, 128, %s630_s12, [#allocation4]  }
0x121f   :  { %770 = dma.done.wait [#allocation4], 128  }
0x1220   :  { %771 = vsyncadd [#allocation4], 4294967168 }
0x1221   :  { %637 = vsyncpa [#allocation4], 1 }

</bundles_post_ra>
